<compile_context>
chip_gen: v5e
topology: v5e:2x2
jax: 0.10.0
libtpu: 0.0.40
codegen_flags: <defaults>
</compile_context>

<pallas_src>
import jax
import jax.numpy as jnp
from jax.experimental import pallas as pl
from jax.experimental.pallas import tpu as pltpu


def _conv1x1x1_kernel(x_ref, w_ref, b_ref, o_ref):
    # x_ref: (C_in, ts)   w_ref: (C_out, C_in)   b_ref: (C_out, 1)
    # o_ref: (C_out, ts)
    acc = jnp.dot(w_ref[...], x_ref[...], preferred_element_type=jnp.float32)
    acc = acc + b_ref[...]                       # bias broadcast over spatial lanes
    # activation: Identity (module default: activation_fn=None, activation_par=None)
    o_ref[...] = acc.astype(o_ref.dtype)


def _pick_spatial_tile(S, max_tile=2048):
    """Spatial tile: full extent if small, else a large multiple of 128."""
    if S <= max_tile:
        return S                                  # block dim == full array dim is always legal
    return max_tile                               # multiple of 128; last partial block is masked


def conv3d_fc_layer(x_ncdhw, weight, bias):
    """1x1x1 conv with bias, identity activation.

    x_ncdhw : (B, C_in, D, H, W) float32
    weight  : (C_out, C_in, 1, 1, 1) float32  (PyTorch Conv3d weight layout)
    bias    : (C_out,) float32
    returns (B, C_out, D, H, W) float32
    """
    B, C_in, D, H, W = x_ncdhw.shape
    C_out = weight.shape[0]
    S = D * H * W

    # Free reshapes (contiguous) -- no transposes, no extra HBM passes.
    x_rows = x_ncdhw.reshape(B, C_in, S)          # (B, C_in, S)
    w_mat = weight.reshape(C_out, C_in)           # (C_out, C_in)
    b_col = bias.reshape(C_out, 1)                # (C_out, 1) -> broadcast over lanes

    ts = _pick_spatial_tile(S)
    grid = (B, pl.cdiv(S, ts))                    # no divisibility requirement

    cost = pl.CostEstimate(
        flops=2 * B * S * C_in * C_out,
        transcendentals=0,
        bytes_accessed=(x_rows.size + w_mat.size + b_col.size + B * C_out * S) * 4,
    )

    # NOTE: for production-sized C_in (>= a few K) add a K grid axis with a VMEM
    # accumulator (pl.when init/finalize) so the weight need not be fully resident.
    out_rows = pl.pallas_call(
        _conv1x1x1_kernel,
        out_shape=jax.ShapeDtypeStruct((B, C_out, S), x_rows.dtype),
        grid_spec=pltpu.PrefetchScalarGridSpec(
            num_scalar_prefetch=0,
            grid=grid,
            in_specs=[
                pl.BlockSpec((None, C_in, ts), lambda b, j: (b, 0, j)),   # x tile (lane-dense)
                pl.BlockSpec((C_out, C_in), lambda b, j: (0, 0)),         # weight, resident
                pl.BlockSpec((C_out, 1), lambda b, j: (0, 0)),            # bias, resident
            ],
            out_specs=pl.BlockSpec((None, C_out, ts), lambda b, j: (b, 0, j)),
        ),
        compiler_params=pltpu.CompilerParams(
            dimension_semantics=("parallel", "parallel")),  # shards across 2 TCs on v7x
        cost_estimate=cost,
    )(x_rows, w_mat, b_col)

    return out_rows.reshape(B, C_out, D, H, W)    # free reshape back to NCDHW


def init_params(key, in_channels, out_channels):
    """Deterministic init matching Conv3dFCLayer.reset_parameters():
    xavier_uniform_ on conv.weight (shape (C_out, C_in, 1, 1, 1)), bias = 0."""
    fan_in = in_channels      # * 1*1*1 kernel
    fan_out = out_channels    # * 1*1*1 kernel
    bound = (6.0 / (fan_in + fan_out)) ** 0.5
    weight = jax.random.uniform(
        key, (out_channels, in_channels, 1, 1, 1),
        minval=-bound, maxval=bound, dtype=jnp.float32)
    bias = jnp.zeros((out_channels,), dtype=jnp.float32)
    return weight, bias


if __name__ == "__main__":
    key = jax.random.PRNGKey(0)
    k_x, k_w = jax.random.split(key)

    # Small shapes consistent with Conv3d forward: (B, C_in, D, H, W)
    B, C_in, D, H, W = 2, 4, 8, 16, 16
    C_out = 8

    x = jax.random.normal(k_x, (B, C_in, D, H, W), dtype=jnp.float32)
    weight, bias = init_params(k_w, C_in, C_out)

    out = conv3d_fc_layer(x, weight, bias)
    out = jax.block_until_ready(out)

    # Reference check (plain JAX 1x1x1 conv)
    ref = jnp.einsum("bcdhw,oc->bodhw", x, weight.reshape(C_out, C_in)) \
        + bias.reshape(1, C_out, 1, 1, 1)
    assert out.shape == (B, C_out, D, H, W)
    assert jnp.allclose(out, ref, atol=1e-5, rtol=1e-5)

    print("KERNEL_OK")
</pallas_src>

<mosaic_0001>
module attributes {stable_mosaic.version = 11 : i64} {
  func.func @_conv1x1x1_kernel(%arg0: i32, %arg1: i32, %arg2: memref<1x4x2048xf32, #tpu.memory_space<vmem>>, %arg3: memref<8x4xf32, #tpu.memory_space<vmem>>, %arg4: memref<8x1xf32, #tpu.memory_space<vmem>>, %arg5: memref<1x8x2048xf32, #tpu.memory_space<vmem>>) attributes {dimension_semantics = [#tpu.dimension_semantics<parallel>, #tpu.dimension_semantics<parallel>], iteration_bounds = array<i64: 2, 1>, scalar_prefetch = 0 : i64, scratch_operands = 0 : i64, tpu.core_type = #tpu.core_type<tc>, window_params = [{transform_indices = @transform_0, window_bounds = array<i64: 1, 4, 2048>}, {pipeline_mode = #tpu.pipeline_mode<synchronous>, transform_indices = @transform_1, window_bounds = array<i64: 8, 4>}, {pipeline_mode = #tpu.pipeline_mode<synchronous>, transform_indices = @transform_2, window_bounds = array<i64: 8, 1>}, {transform_indices = @transform_3, window_bounds = array<i64: 1, 8, 2048>}]} {
    %c0 = arith.constant 0 : index
    %c0_0 = arith.constant 0 : index
    %0 = vector.load %arg3[%c0, %c0_0] : memref<8x4xf32, #tpu.memory_space<vmem>>, vector<8x4xf32>
    %c0_1 = arith.constant 0 : index
    %c0_2 = arith.constant 0 : index
    %c0_3 = arith.constant 0 : index
    %1 = vector.load %arg2[%c0_1, %c0_2, %c0_3] : memref<1x4x2048xf32, #tpu.memory_space<vmem>>, vector<1x4x2048xf32>
    %2 = vector.shape_cast %1 : vector<1x4x2048xf32> to vector<4x2048xf32>
    %cst = arith.constant dense<0.000000e+00> : vector<8x2048xf32>
    %3 = tpu.matmul %0, %2, %cst {dimension_numbers = #tpu.dot_dimension_numbers<[1], [0], [0], [1], [0, 0, 1, 1], [], []>} : vector<8x4xf32>, vector<4x2048xf32>, vector<8x2048xf32> -> vector<8x2048xf32>
    %c0_4 = arith.constant 0 : index
    %c0_5 = arith.constant 0 : index
    %4 = vector.load %arg4[%c0_4, %c0_5] : memref<8x1xf32, #tpu.memory_space<vmem>>, vector<8x1xf32>
    %5 = vector.broadcast %4 : vector<8x1xf32> to vector<8x2048xf32>
    %6 = arith.addf %3, %5 : vector<8x2048xf32>
    %c0_6 = arith.constant 0 : index
    %c0_7 = arith.constant 0 : index
    %c0_8 = arith.constant 0 : index
    %7 = vector.load %arg5[%c0_6, %c0_7, %c0_8] : memref<1x8x2048xf32, #tpu.memory_space<vmem>>, vector<1x8x2048xf32>
    %8 = vector.shape_cast %7 : vector<1x8x2048xf32> to vector<8x2048xf32>
    %9 = vector.shape_cast %6 : vector<8x2048xf32> to vector<1x8x2048xf32>
    tpu.vector_store %arg5[%c0_6, %c0_7, %c0_8], %9 {strides = array<i32>} : memref<1x8x2048xf32, #tpu.memory_space<vmem>>, vector<1x8x2048xf32>,
    return
  }
  func.func @transform_0(%arg0: i32, %arg1: i32) -> (i32, i32, i32) {
    %c0_i32 = arith.constant 0 : i32
    %c0_i32_0 = arith.constant 0 : i32
    return %arg0, %c0_i32, %arg1 : i32, i32, i32
  }
  func.func @transform_1(%arg0: i32, %arg1: i32) -> (i32, i32) {
    %c0_i32 = arith.constant 0 : i32
    %c0_i32_0 = arith.constant 0 : i32
    %c0_i32_1 = arith.constant 0 : i32
    return %c0_i32, %c0_i32_0 : i32, i32
  }
  func.func @transform_2(%arg0: i32, %arg1: i32) -> (i32, i32) {
    %c0_i32 = arith.constant 0 : i32
    %c0_i32_0 = arith.constant 0 : i32
    %c0_i32_1 = arith.constant 0 : i32
    return %c0_i32, %c0_i32_0 : i32, i32
  }
  func.func @transform_3(%arg0: i32, %arg1: i32) -> (i32, i32, i32) {
    %c0_i32 = arith.constant 0 : i32
    %c0_i32_0 = arith.constant 0 : i32
    return %arg0, %c0_i32, %arg1 : i32, i32, i32
  }
}

</mosaic_0001>

<bundles_post_ra>
// kernel: tpu_custom_call.1
= control target key start
LH: loop header
LB: loop body
LE: loop exit
PB: predicated region body
PF: predicated region fallthrough
CT: control target
= control target key end

     0   :  { %8 = vsyncpa [#allocation3], 0  ;;  %s1171_s0 = inlined_call_operand.hbm [shape: f32[2,4,2048], index: 0, kind: input, shape index: {}]   ;;  %s1172_s1 = inlined_call_operand.vmem [shape: f32[8,4], index: 1, kind: input, shape index: {}]   ;;  %s1173_s2 = inlined_call_operand.vmem [shape: f32[8,1], index: 2, kind: input, shape index: {}]   ;;  %s1174_s3 = inlined_call_operand.hbm [shape: f32[2,8,2048], index: 3, kind: output, shape index: {}]  }
   0x1   :  { %10 = vsyncpa [#allocation3 + $0x1], 0 }
   0x2   :  { %11 = vsyncpa [#allocation4], 0 }
   0x3   :  { %13 = vsyncpa [#allocation4 + $0x1], 0  ;;  %s983_s12 = smov 0   ;;  %s985_s13 = smov 0  }
   0x4   :  { %s987_s14 = smov 0   ;;  %s989_s15 = smov 0  }
   0x5   :  { %s991_s16 = smov 0   ;;  %s993_s17 = smov 0  }
   0x6 LB: > { %s735_s18 = sadd.s32 4294967295, %s960_s17   ;;  %s736_s19 = sadd.s32 4294967294, %s960_s17   ;;  %s960_s17 = sphi %s993_s17, %s19_s17   ;;  %s956_s16 = sphi %s991_s16, %s1183_s16   ;;  %s952_s15 = sphi %s989_s15, %s1182_s15   ;;  %s948_s14 = sphi %s987_s14, %s1181_s14   ;;  %s944_s13 = sphi %s985_s13, %s1180_s13   ;;  %s940_s12 = sphi %s983_s12, %s1179_s12  }
   0x7   : > { %s31_s20 = sadd.s32 1, %s956_s16  ;;  %s40_s21 = sadd.s32 1, %s948_s14 }
   0x8   : > { %p33_p0 = scmp.ge.s32.totalorder %s31_s20, 2  ;;  %p47_p1 = scmp.ne.s32.totalorder %s948_s14, %s944_s13 }
   0x9   : > { %p48_p2 = scmp.eq.s32.totalorder %s960_s17, 0  ;;  %p53_p3 = scmp.ne.s32.totalorder %s944_s13, %s940_s12 }
   0xa   : > { %s1185_s20 = smov (%p33_p0, %s31_s20), 0  ;;  %p54_p5 = scmp.eq.s32.totalorder %s735_s18, 0 }
   0xb   : > { %p1024_p4 = por %p48_p2, %p47_p1  ;;  %s35_s23 = ssub.s32 %s956_s16, %s1185_s20 }
   0xc   : > { %p121_p6 = scmp.eq.s32.totalorder %s735_s18, 1  ;;  %p38_p7 = scmp.eq.s32.totalorder %s35_s23, 0 }
   0xd   : > { %p1030_p8 = por %p54_p5, %p53_p3  ;;  %p127_p10 = scmp.eq.s32.totalorder %s736_s19, 1 }
   0xe   : > { %p1034_p9 = por %p121_p6, %p47_p1  ;;  %p738_p12 = scmp.ge.s32.totalorder %s960_s17, 2 }
   0xf   : > { %s1039_s26 = scalar_select %p38_p7, %s948_s14, %s40_s21  }
  0x10   : > { %p1041_p11 = por %p127_p10, %p53_p3  ;;  %p796_p13 = scmp.lt.s32.totalorder %s960_s17, 2 }
  0x11   : > { %s153_s28 = sand.u32 1, %s948_s14   ;;  %s782_s30 = sshll.u32 %s956_s16, 6 }
  0x12   : > { %s739_s29 = sshll.u32 %s153_s28, 6  ;;  %s164_s6 = scalar_lea.hbm %s1171_s0, %s782_s30 }
  0x13   : > { %s157_s7 = scalar_lea.vmem [#allocation2], %s739_s29  ;;  %s166_s9 = sshll.u32 %s164_s6, 4  ;;  %s167_s9 = int_to_ptr.hbm [resolvable:$true] %s166_s9 }
  0x14   : > { %s168_s8 = sshll.u32 %s157_s7, 4  ;;  %p789_p0 = pnand %p796_p13, %p1024_p4  ;;  %s169_s8 = int_to_ptr.vmem [resolvable:$true] %s168_s8 }
  0x15   : > { %p742_p1 = scmp.ge.s32.totalorder %s960_s17, 1  ;;  %p173_p2 = scmp.lt.s32.totalorder %s960_s17, 3 }
  0x16   : > { %s154_s10 = scalar_lea.sflag [#allocation3], %s153_s28 }
  0x17   : > { %791 = dma.hbm_to_vmem [thread:$0]  (!%p789_p0), %s167_s9, 1024, %s169_s8, %s154_s10  }
  0x18   : > { %p174_p3 = pnand %p742_p1, %p173_p2 }
  0x19   : > { %s1057_s11 = sand.u32 (!%p174_p3), 1, %s944_s13  }
  0x1a   : > { %177 = sbr.rel (%p174_p3) target bundleno = 204 (0xcc), region = 32  ;;  %s743_s18 = sshll.u32 (!%p174_p3), %s1057_s11, 6 }
  0x1b   : > { %s180_s19 = scalar_lea.sflag (!%p174_p3), [#allocation3], %s1057_s11  ;;  %s1061_s21 = scalar_lea.vmem (!%p174_p3), [#allocation2], %s743_s18 }
  0x1f   : > { %931 = dma.done.wait (%p1030_p8), %s180_s19, 1024  }
  0x20   : > { %933 = vsyncadd (%p1030_p8), %s180_s19, 4294966272  ;;  %v962_v0 = vmov 0   ;;  %v211_v1 = vld [vmem:[%s1061_s21 + $0x8] sm:$0xff]  ;;  %v213_v2 = vld [vmem:[%s1061_s21 + $0x18] sm:$0xff]  ;;  %vm263_vm0 = vcmask 1043456   ;;  %vm259_vm1 = vcmask 31744  }
  0x21   : > { %847 = vset.pattern.permute.xlu0 %v962_v0  ;;  %234 = vst [vmem:[#allocation1 + $0x10] ss:$2 sm:$0xff] %v211_v1  ;;  %v210_v3 = vld [vmem:[%s1061_s21] sm:$0xff]  ;;  %v212_v4 = vld [vmem:[%s1061_s21 + $0x10] sm:$0xff]  ;;  %v218_v5 = vld [vmem:[%s1173_s2] sm:$0xff]  ;;  %s744_s29 = sshll.u32 %s1057_s11, 7 }
  0x22   : > { %238 = vst [vmem:[#allocation1 + $0x30] ss:$2 sm:$0xff] %v213_v2  ;;  %221 = vperm.xlu0 %847, %v218_v5   ;;  %v215_v6 = vld [vmem:[%s1061_s21 + $0x28] sm:$0xff]  ;;  %v209_v7 = vld [vmem:[%s1172_s1] sm:$0xff]  ;;  %v214_v12 = vld [vmem:[%s1061_s21 + $0x20] sm:$0xff]  ;;  %s1114_s30 = scalar_lea.vmem [#allocation5], %s744_s29 }
  0x23   : > { %232 = vst [vmem:[#allocation1] ss:$2 sm:$0xff] %v210_v3  ;;  %v217_v8 = vld [vmem:[%s1061_s21 + $0x38] sm:$0xff]  ;;  %v216_v16 = vld [vmem:[%s1061_s21 + $0x30] sm:$0xff]  ;;  %s783_s4 = sshll.u32 %s952_s15, 7  ;;  %s648_s8 = sshll.u32 %s1114_s30, 4  ;;  %s649_s8 = int_to_ptr.vmem [resolvable:$true] %s648_s8 }
  0x24   : > { %236 = vst [vmem:[#allocation1 + $0x20] ss:$2 sm:$0xff] %v212_v4  ;;  %s646_s7 = scalar_lea.hbm %s1174_s3, %s783_s4  ;;  %s633_s15 = scalar_lea.sflag [#allocation4], %s1057_s11 }
  0x25   : > { %s650_s9 = sshll.u32 %s646_s7, 4  ;;  %s898_s22 = scalar_lea.hbm %s1174_s3, 256  ;;  %s651_s9 = int_to_ptr.hbm [resolvable:$true] %s650_s9 }
  0x26   : > { %s892_s10 = sshra.s32 %s651_s9, 4  ;;  %s893_s10 = int_to_ptr.hbm [resolvable:$true] %s892_s10 }
  0x27   : > { %s894_s18 = scalar_lea.hbm %s893_s10, 128  ;;  %p899_p7 = scmp.lt.s32.totalorder %s893_s10, %s1174_s3 }
  0x28   : > { %v241_v9 = vld.sshfl [vmem:[#allocation1 + $0x10] sm:$0xff pattern:$0x75316420]  ;;  %v242_v10 = vld.sshfl [vmem:[#allocation1 + $0x18] sm:$0xff pattern:$0x75316420]  ;;  %p895_p4 = scmp.ne.s32.totalorder %s893_s10, %s894_s18  ;;  %p900_p8 = scmp.lt.s32.totalorder %s898_s22, %s894_s18 }
  0x29   : > { %749 = vmatpush.msk.msra.mxu2 %vm263_vm0, %v241_v9  ;;  %248 = vst [vmem:[#allocation1 + $0x10] ss:$2 sm:$0xff] %v215_v6  ;;  %751 = vmatpush.msk.msra.mxu3 %vm263_vm0, %v242_v10  ;;  %v245_v11 = vld.sshfl [vmem:[#allocation1 + $0x30] sm:$0xff pattern:$0x75316420] }
  0x2a   : > { %750 = vmatmul.msk.f32.vlgmr.msra.gmra.mxu2 %vm259_vm1, %v209_v7  ;;  %752 = vmatmul.msk.f32.vlgmr.msra.gmra.mxu3 %vm259_vm1, %v209_v7  ;;  %v246_v13 = vld.sshfl [vmem:[#allocation1 + $0x38] sm:$0xff pattern:$0x75316420]  ;;  %v239_v14 = vld.sshfl [vmem:[#allocation1] sm:$0xff pattern:$0x75316420]  ;;  %p896_p5 = pnand %p895_p4, %p1034_p9  ;;  %p901_p10 = por %p900_p8, %p899_p7 }
  0x2b   : > { %757 = vmatpush.msk.msrb.mxu2 %vm263_vm0, %v245_v11  ;;  %250 = vst [vmem:[#allocation1 + $0x30] ss:$2 sm:$0xff] %v217_v8  ;;  %759 = vmatpush.msk.msrb.mxu3 %vm263_vm0, %v246_v13  ;;  %v240_v15 = vld.sshfl [vmem:[#allocation1 + $0x8] sm:$0xff pattern:$0x75316420] }
  0x2c   : > { %745 = vmatpush.msk.msra.mxu0 %vm263_vm0, %v239_v14  ;;  %247 = vst [vmem:[#allocation1] ss:$2 sm:$0xff] %v214_v12  ;;  %747 = vmatpush.msk.msra.mxu1 %vm263_vm0, %v240_v15  ;;  %v243_v17 = vld.sshfl [vmem:[#allocation1 + $0x20] sm:$0xff pattern:$0x75316420]  ;;  %p897_p6 = pneg %p896_p5 }
  0x2d   : > { %746 = vmatmul.msk.f32.vlgmr.msra.gmra.mxu0 %vm259_vm1, %v209_v7  ;;  %748 = vmatmul.msk.f32.vlgmr.msra.gmra.mxu1 %vm259_vm1, %v209_v7  ;;  %v244_v18 = vld.sshfl [vmem:[#allocation1 + $0x28] sm:$0xff pattern:$0x75316420] }
  0x2e   : > { %753 = vmatpush.msk.msrb.mxu0 %vm263_vm0, %v243_v17  ;;  %249 = vst [vmem:[#allocation1 + $0x20] ss:$2 sm:$0xff] %v216_v16  ;;  %755 = vmatpush.msk.msrb.mxu1 %vm263_vm0, %v244_v18  ;;  %p902_p13 = pnand %p901_p10, %p897_p6 }
  0x30   : > { %v253_v19 = vld.sshfl [vmem:[#allocation1 + $0x10] sm:$0xff pattern:$0x75316420]  ;;  %v254_v20 = vld.sshfl [vmem:[#allocation1 + $0x18] sm:$0xff pattern:$0x75316420] }
  0x31   : > { %765 = vmatpush.msk.msra.mxu2 %vm263_vm0, %v253_v19  ;;  %767 = vmatpush.msk.msra.mxu3 %vm263_vm0, %v254_v20 }
  0x32   : > { %758 = vmatmul.msk.f32.vlgmr.msrb.gmra.mxu2 %vm259_vm1, %v209_v7  ;;  %760 = vmatmul.msk.f32.vlgmr.msrb.gmra.mxu3 %vm259_vm1, %v209_v7  ;;  %v257_v21 = vld.sshfl [vmem:[#allocation1 + $0x30] sm:$0xff pattern:$0x75316420]  ;;  %v258_v22 = vld.sshfl [vmem:[#allocation1 + $0x38] sm:$0xff pattern:$0x75316420] }
  0x33   : > { %v251_v23 = vld.sshfl [vmem:[#allocation1] sm:$0xff pattern:$0x75316420]  ;;  %v252_v24 = vld.sshfl [vmem:[#allocation1 + $0x8] sm:$0xff pattern:$0x75316420]  ;;  %773 = vmatpush.msk.msrb.mxu2 %vm263_vm0, %v257_v21  ;;  %775 = vmatpush.msk.msrb.mxu3 %vm263_vm0, %v258_v22 }
  0x34   : > { %761 = vmatpush.msk.msra.mxu0 %vm263_vm0, %v251_v23  ;;  %763 = vmatpush.msk.msra.mxu1 %vm263_vm0, %v252_v24 }
  0x35   : > { %754 = vmatmul.msk.f32.vlgmr.msrb.gmra.mxu0 %vm259_vm1, %v209_v7  ;;  %756 = vmatmul.msk.f32.vlgmr.msrb.gmra.mxu1 %vm259_vm1, %v209_v7  ;;  %v255_v25 = vld.sshfl [vmem:[#allocation1 + $0x20] sm:$0xff pattern:$0x75316420]  ;;  %v256_v26 = vld.sshfl [vmem:[#allocation1 + $0x28] sm:$0xff pattern:$0x75316420] }
  0x36   : > { %769 = vmatpush.msk.msrb.mxu0 %vm263_vm0, %v255_v25  ;;  %771 = vmatpush.msk.msrb.mxu1 %vm263_vm0, %v256_v26 }
  0x3a   : > { %766 = vmatmul.msk.f32.vlgmr.msra.gmra.mxu2 %vm259_vm1, %v209_v7  ;;  %768 = vmatmul.msk.f32.vlgmr.msra.gmra.mxu3 %vm259_vm1, %v209_v7 }
  0x3d   : > { %762 = vmatmul.msk.f32.vlgmr.msra.gmra.mxu0 %vm259_vm1, %v209_v7  ;;  %764 = vmatmul.msk.f32.vlgmr.msra.gmra.mxu1 %vm259_vm1, %v209_v7 }
  0x42   : > { %774 = vmatmul.msk.f32.vlgmr.msrb.gmra.mxu2 %vm259_vm1, %v209_v7  ;;  %776 = vmatmul.msk.f32.vlgmr.msrb.gmra.mxu3 %vm259_vm1, %v209_v7 }
  0x45   : > { %770 = vmatmul.msk.f32.vlgmr.msrb.gmra.mxu0 %vm259_vm1, %v209_v7  ;;  %772 = vmatmul.msk.f32.vlgmr.msrb.gmra.mxu1 %vm259_vm1, %v209_v7 }
  0x94   : > { %v222_v27 = vpop.permute.xlu0 %221 }
  0xaa   : > { %v313_v28 = vpop.f32.mrf.mxu0  ;;  %v333_v29 = vpop.f32.mrf.mxu1 }
  0xab   : > { %v314_v30 = vadd.f32 %v313_v28, %v222_v27  ;;  %v334_v31 = vadd.f32 %v333_v29, %v222_v27 }
  0xad   : > { %616 = vst [vmem:[%s1114_s30] sm:$0xff] %v314_v30  ;;  %v353_v32 = vpop.f32.mrf.mxu2  ;;  %v373_v33 = vpop.f32.mrf.mxu3 }
  0xae   : > { %617 = vst [vmem:[%s1114_s30 + $0x8] sm:$0xff] %v334_v31  ;;  %v354_v34 = vadd.f32 %v353_v32, %v222_v27  ;;  %v374_v35 = vadd.f32 %v373_v33, %v222_v27 }
  0xb0   : > { %618 = vst [vmem:[%s1114_s30 + $0x10] sm:$0xff] %v354_v34 }
  0xb1   : > { %619 = vst [vmem:[%s1114_s30 + $0x18] sm:$0xff] %v374_v35 }
  0xb2   : > { %v393_v36 = vpop.f32.mrf.mxu0  ;;  %v413_v37 = vpop.f32.mrf.mxu1 }
  0xb3   : > { %v394_v38 = vadd.f32 %v393_v36, %v222_v27  ;;  %v414_v39 = vadd.f32 %v413_v37, %v222_v27 }
  0xb5   : > { %620 = vst [vmem:[%s1114_s30 + $0x20] sm:$0xff] %v394_v38  ;;  %v433_v40 = vpop.f32.mrf.mxu2  ;;  %v453_v41 = vpop.f32.mrf.mxu3 }
  0xb6   : > { %621 = vst [vmem:[%s1114_s30 + $0x28] sm:$0xff] %v414_v39  ;;  %v434_v42 = vadd.f32 %v433_v40, %v222_v27  ;;  %v454_v43 = vadd.f32 %v453_v41, %v222_v27 }
  0xb8   : > { %622 = vst [vmem:[%s1114_s30 + $0x30] sm:$0xff] %v434_v42 }
  0xb9   : > { %623 = vst [vmem:[%s1114_s30 + $0x38] sm:$0xff] %v454_v43 }
  0xba   : > { %v473_v44 = vpop.f32.mrf.mxu0  ;;  %v493_v45 = vpop.f32.mrf.mxu1 }
  0xbb   : > { %v474_v46 = vadd.f32 %v473_v44, %v222_v27  ;;  %v494_v47 = vadd.f32 %v493_v45, %v222_v27 }
  0xbd   : > { %624 = vst [vmem:[%s1114_s30 + $0x40] sm:$0xff] %v474_v46  ;;  %v513_v48 = vpop.f32.mrf.mxu2  ;;  %v533_v49 = vpop.f32.mrf.mxu3 }
  0xbe   : > { %625 = vst [vmem:[%s1114_s30 + $0x48] sm:$0xff] %v494_v47  ;;  %v514_v50 = vadd.f32 %v513_v48, %v222_v27  ;;  %v534_v51 = vadd.f32 %v533_v49, %v222_v27 }
  0xc0   : > { %626 = vst [vmem:[%s1114_s30 + $0x50] sm:$0xff] %v514_v50 }
  0xc1   : > { %627 = vst [vmem:[%s1114_s30 + $0x58] sm:$0xff] %v534_v51 }
  0xc2   : > { %v553_v52 = vpop.f32.mrf.mxu0  ;;  %v573_v53 = vpop.f32.mrf.mxu1 }
  0xc3   : > { %v554_v54 = vadd.f32 %v553_v52, %v222_v27  ;;  %v574_v55 = vadd.f32 %v573_v53, %v222_v27 }
  0xc5   : > { %628 = vst [vmem:[%s1114_s30 + $0x60] sm:$0xff] %v554_v54  ;;  %v593_v56 = vpop.f32.mrf.mxu2  ;;  %v613_v57 = vpop.f32.mrf.mxu3 }
  0xc6   : > { %629 = vst [vmem:[%s1114_s30 + $0x68] sm:$0xff] %v574_v55  ;;  %v594_v58 = vadd.f32 %v593_v56, %v222_v27  ;;  %v614_v59 = vadd.f32 %v613_v57, %v222_v27 }
  0xc8   : > { %630 = vst [vmem:[%s1114_s30 + $0x70] sm:$0xff] %v594_v58 }
  0xc9   : > { %631 = vst [vmem:[%s1114_s30 + $0x78] sm:$0xff] %v614_v59 }
  0xca   : > { %905 = shalt.err (!%p902_p13)
}
  0xcb   : > { %786 = dma.vmem_to_hbm [thread:$0]  (%p1034_p9), %s649_s8, 2048, %s651_s9, %s633_s15  }
  0xcc PF: > { %s662_s11 = sand.u32 1, %s940_s12   ;;  %p793_p0 = pnand %p738_p12, %p1041_p11 }
  0xcd   : > { %s663_s28 = scalar_lea.sflag [#allocation4], %s662_s11 }
  0xce   : > { %p794_p1 = pneg %p793_p0 }
  0xd0   : > { %935 = dma.done.wait (%p794_p1), %s663_s28, 2048  }
  0xd1   : > { %937 = vsyncadd (%p794_p1), %s663_s28, 4294965248  ;;  %s19_s17 = sadd.s32 1, %s960_s17   ;;  %s1179_s12 = smov %s944_s13 }
  0xd2   : > { %p16_p2 = scmp.ge.s32.totalorder %s19_s17, 4   ;;  %s1180_s13 = smov %s948_s14 }
  0xd3   : > { %s1181_s14 = smov %s1039_s26  ;;  %s1182_s15 = smov %s956_s16 }
  0xd4   : > { %s1183_s16 = smov %s1185_s20  ;;  %18 = sbr.rel (!%p16_p2) target bundleno = 6 (0x6), region = 80 }
  0xd9   :  { %669 = vsyncpa [#allocation3], 1 }
  0xda   :  { %671 = vsyncpa [#allocation3 + $0x1], 1 }
  0xdb   :  { %672 = vsyncpa [#allocation4], 1 }
  0xdc   :  { %674 = vsyncpa [#allocation4 + $0x1], 1 }

</bundles_post_ra>
